<compile_context>
chip_gen: v5e
topology: v5e:2x2
jax: 0.10.0
libtpu: 0.0.40
codegen_flags: <defaults>
</compile_context>

<pallas_src>
import jax
import jax.numpy as jnp
from jax.experimental import pallas as pl
from jax.experimental.pallas import tpu as pltpu


def make_kernel(rows, E, H, A, n_max):
    R_WF, R_A, R_B, R_BIAS = rows["wf"], rows["a"], rows["b"], rows["bias"]

    def kernel(lens_ref, emb_ref, rew_ref, p_ref, out_ref):
        b = pl.program_id(0)
        n = lens_ref[b]                                # true history length (1..n_max)

        emb = emb_ref[...]                             # [n_max, E]
        rew = rew_ref[...]                             # [n_max, 1] f32, integer-valued

        # row-validity / most-recent-row masks (history padded to n_max)
        row = jax.lax.broadcasted_iota(jnp.int32, (n_max, 1), 0)
        valid = row < n                                # [n_max, 1]
        last_f = (row == n - 1).astype(jnp.float32)    # one-hot of most recent row

        # reward-embedding lookup: VPU 3-way select.  Rewards are integer-valued
        # floats (-1 / 1 / 2), so exact float compare matches the torch module.
        t0 = p_ref[R_BIAS + 6:R_BIAS + 7, H:H + E]     # skip  (default)
        t1 = p_ref[R_BIAS + 7:R_BIAS + 8, H:H + E]     # view  (reward == 1)
        t2 = p_ref[R_BIAS + 8:R_BIAS + 9, H:H + E]     # read  (reward == 2)
        r_emb = jnp.where(rew == 1.0, t1, jnp.where(rew == 2.0, t2, t0))   # [n_max, E]

        # fused attention|interaction layer-1: one [n_max,2E]@[2E,2H] MXU dot
        combined = jnp.concatenate([emb, r_emb], axis=1)                   # [n_max, 2E]
        w_f = p_ref[R_WF:R_WF + 2 * E, :]                                  # [2E, 2H]
        pre1 = jnp.dot(combined, w_f, preferred_element_type=jnp.float32)  # [n_max, 2H]

        b1a = p_ref[R_BIAS + 0:R_BIAS + 1, H:]                             # [1, H]
        b1i = p_ref[R_BIAS + 1:R_BIAS + 2, H:]                             # [1, H]
        h_a = jnp.tanh(pre1[:, :H] + b1a)                                  # [n_max, H]
        # interaction hidden of the most recent valid interaction only
        pre_i = jnp.sum(pre1[:, H:] * last_f, axis=0, keepdims=True)       # [1, H]
        h_i = jnp.maximum(pre_i + b1i, 0.0)                                # [1, H]
        recent = jnp.sum(emb * last_f, axis=0, keepdims=True)              # [1, E]

        # attention scores: VPU mul + lane reduce.  b2a is dropped — softmax is
        # invariant to a constant shift of every score.
        w2a = p_ref[R_BIAS + 2:R_BIAS + 3, H:]                             # [1, H]
        scores = jnp.sum(h_a * w2a, axis=-1, keepdims=True)                # [n_max, 1]
        scores = jnp.where(valid, scores, jnp.float32(-1e30))              # mask pads
        m = jnp.max(scores, axis=0, keepdims=True)
        e = jnp.exp(scores - m)                                            # pad rows -> 0
        attn = e * pl.reciprocal(jnp.sum(e, axis=0, keepdims=True), approx=True)
        ws = jnp.sum(emb * attn, axis=0, keepdims=True)                    # [1, E]

        # context encoder; the interaction-encoder 2nd layer is folded into
        # w_ictx / b_ctx host-side, so h_i feeds the context sum directly.
        w_ws = p_ref[R_B:R_B + E, H:]                                      # [E, H]
        w_rc = p_ref[R_B + E:R_B + 2 * E, H:]                              # [E, H]
        w_ic = p_ref[R_B:R_B + H, :H]                                      # [H, H]
        b_c = p_ref[R_BIAS + 3:R_BIAS + 4, H:]                             # [1, H]
        h_c = jnp.maximum(
            jnp.dot(ws, w_ws, preferred_element_type=jnp.float32)
            + jnp.dot(recent, w_rc, preferred_element_type=jnp.float32)
            + jnp.dot(h_i, w_ic, preferred_element_type=jnp.float32)
            + b_c, 0.0)                                                    # [1, H]

        # context-encoder 2nd layer + policy layer-1 folded host-side
        # (no nonlinearity between them): h_p = relu(h_c @ (w2c@w1p) + b)
        w_cp = p_ref[R_A:R_A + H, :H]                                      # [H, H]
        b_cp = p_ref[R_BIAS + 4:R_BIAS + 5, H:]                            # [1, H]
        h_p = jnp.maximum(
            jnp.dot(h_c, w_cp, preferred_element_type=jnp.float32) + b_cp, 0.0)

        # policy head: lane-dense [1, H] logits (weight columns >= A are zero)
        w2p = p_ref[R_A:R_A + H, H:]                                       # [H, H]
        b2p = p_ref[R_BIAS + 5:R_BIAS + 6, H:]                             # [1, H]
        logits = jnp.dot(h_p, w2p, preferred_element_type=jnp.float32) + b2p

        # exact masked softmax over the action lanes (padded lanes -> exactly 0)
        lane = jax.lax.broadcasted_iota(jnp.int32, (1, H), 1)
        masked = jnp.where(lane < A, logits, jnp.float32(-1e30))
        mm = jnp.max(masked, axis=-1, keepdims=True)
        ee = jnp.exp(masked - mm)
        out_ref[...] = ee / jnp.sum(ee, axis=-1, keepdims=True)

    return kernel


def make_params(key, embedding_dim, action_dim, hidden_dim):
    E, A, H = embedding_dim, action_dim, hidden_dim
    ks = jax.random.split(key, 16)

    def lin(k, fan_in, fan_out):
        kw, kb = jax.random.split(k)
        bound = 1.0 / jnp.sqrt(fan_in)
        w = jax.random.uniform(kw, (fan_in, fan_out), jnp.float32, -bound, bound)
        b = jax.random.uniform(kb, (1, fan_out), jnp.float32, -bound, bound)
        return w, b

    params = {}
    params["table"] = jax.random.normal(ks[0], (3, E), jnp.float32)
    params["w1a"], params["b1a"] = lin(ks[1], 2 * E, H)
    params["w2a"], params["b2a"] = lin(ks[2], H, 1)
    params["w1i"], params["b1i"] = lin(ks[3], 2 * E, H)
    params["w2i"], params["b2i"] = lin(ks[4], H, E)
    params["w1c"], params["b1c"] = lin(ks[5], 3 * E, H)
    params["w2c"], params["b2c"] = lin(ks[6], H, E)
    params["w1p"], params["b1p"] = lin(ks[7], E, H)
    params["w2p"], params["b2p"] = lin(ks[8], H, A)
    return params


def pack_params(params, E, H, A):
    """Pack (and partially fold) every parameter into one [R, 2H] f32 slab.

    Layout (all slices in the kernel are 128-lane-tile aligned):
      rows [0, 2E)        lanes [0,2H)   : w_fused = [w1a | w1i]           [2E,2H]
      rows [R_A, R_A+H)   lanes [0,H)    : w_cp   = w2c @ w1p              [H, H]
                          lanes [H,2H)   : w2p zero-padded to H columns    [H, H]
      rows [R_B, R_B+H)   lanes [0,H)    : w_ictx = w2i @ w1c_int          [H, H]
      rows [R_B, R_B+E)   lanes [H,2H)   : w1c_ws                          [E, H]
      rows [R_B+E,R_B+2E) lanes [H,2H)   : w1c_rec                         [E, H]
      rows R_BIAS+0..8    lanes [H,2H)   : b1a, b1i, w2a.T, b_ctx, b_cp,
                                           b2p(pad), table[0..2]
      (b2a is dropped: softmax over scores is shift-invariant.)
    """
    assert E % 8 == 0 and H % 128 == 0 and A <= H and 2 * E + 9 <= H and E <= H

    W = 2 * H
    R_WF = 0
    R_A = 2 * E
    R_B = R_A + H
    R_BIAS = R_B + 2 * E
    n_rows = R_B + H

    w1a, b1a = params["w1a"], params["b1a"]
    w1i, b1i = params["w1i"], params["b1i"]
    w2a = params["w2a"]
    w2i, b2i = params["w2i"], params["b2i"]
    w1c, b1c = params["w1c"], params["b1c"]
    w2c, b2c = params["w2c"], params["b2c"]
    w1p, b1p = params["w1p"], params["b1p"]
    w2p, b2p = params["w2p"], params["b2p"]
    table = params["table"]

    w_fused = jnp.concatenate([w1a, w1i], axis=1)        # [2E, 2H]
    w1c_ws, w1c_rec, w1c_int = w1c[:E], w1c[E:2 * E], w1c[2 * E:]
    w_ictx = w2i @ w1c_int                               # [H, H]
    b_ctx = b1c + b2i @ w1c_int                          # [1, H]
    w_cp = w2c @ w1p                                     # [H, H]
    b_cp = b1p + b2c @ w1p                               # [1, H]

    slab = jnp.zeros((n_rows, W), jnp.float32)
    slab = slab.at[R_WF:R_WF + 2 * E, :].set(w_fused)
    slab = slab.at[R_A:R_A + H, :H].set(w_cp)
    slab = slab.at[R_A:R_A + H, H:H + A].set(w2p)
    slab = slab.at[R_B:R_B + H, :H].set(w_ictx)
    slab = slab.at[R_B:R_B + E, H:].set(w1c_ws)
    slab = slab.at[R_B + E:R_B + 2 * E, H:].set(w1c_rec)
    slab = slab.at[R_BIAS + 0, H:].set(b1a[0])
    slab = slab.at[R_BIAS + 1, H:].set(b1i[0])
    slab = slab.at[R_BIAS + 2, H:].set(w2a[:, 0])
    slab = slab.at[R_BIAS + 3, H:].set(b_ctx[0])
    slab = slab.at[R_BIAS + 4, H:].set(b_cp[0])
    slab = slab.at[R_BIAS + 5, H:H + A].set(b2p[0])
    slab = slab.at[R_BIAS + 6:R_BIAS + 9, H:H + E].set(table)

    rows = {"wf": R_WF, "a": R_A, "b": R_B, "bias": R_BIAS}
    return slab, rows


def policy_forward(embeddings, rewards, lengths, slab, rows, E, H, A, n_max):
    """Batched forward.

    embeddings: [B, n_max, E] f32 (rows >= lengths[b] are ignored, must be finite)
    rewards:    [B, n_max]    integer-valued (-1 / 1 / 2; pad value irrelevant)
    lengths:    [B] int32 in [1, n_max]
    Returns [B, A] action distributions.
    """
    # TODO(synk): the torch module's empty-history early return
    # (len(embeddings)==0 -> zeros state) is handled by the caller, not in-kernel.
    B = embeddings.shape[0]
    emb = jnp.asarray(embeddings, jnp.float32)
    rew = jnp.asarray(rewards, jnp.float32).reshape(B, n_max, 1)
    lengths = jnp.asarray(lengths, jnp.int32)

    grid_spec = pltpu.PrefetchScalarGridSpec(
        num_scalar_prefetch=1,
        grid=(B,),
        in_specs=[
            pl.BlockSpec((None, n_max, E), lambda b, lens: (b, 0, 0)),
            pl.BlockSpec((None, n_max, 1), lambda b, lens: (b, 0, 0)),
            # constant index_map: the weight slab is DMA'd once and stays
            # VMEM-resident across all batch grid steps.
            pl.BlockSpec(slab.shape, lambda b, lens: (0, 0)),
        ],
        out_specs=pl.BlockSpec((None, 1, H), lambda b, lens: (b, 0, 0)),
    )
    out = pl.pallas_call(
        make_kernel(rows, E, H, A, n_max),
        out_shape=jax.ShapeDtypeStruct((B, 1, H), jnp.float32),
        grid_spec=grid_spec,
        compiler_params=pltpu.CompilerParams(
            dimension_semantics=("parallel",)),     # shard batch across TCs (v7x)
    )(lengths, emb, rew, slab)
    return out[:, 0, :A]


def policy_forward_ref(embeddings, rewards, params):
    """Pure-JAX per-sample reference (mirrors the PyTorch forward)."""
    rewards = jnp.asarray(rewards)
    idx = jnp.where(rewards == 1, 1, jnp.where(rewards == 2, 2, 0)).astype(jnp.int32)
    r_emb = params["table"][idx]                                     # [N, E]
    combined = jnp.concatenate([embeddings, r_emb], axis=1)
    h_a = jnp.tanh(combined @ params["w1a"] + params["b1a"])
    scores = h_a @ params["w2a"] + params["b2a"]
    attn = jax.nn.softmax(scores, axis=0)
    weighted_sum = (embeddings * attn).sum(axis=0)
    recent = embeddings[-1]
    recent_r = r_emb[-1]
    h_i = jax.nn.relu(jnp.concatenate([recent, recent_r]) @ params["w1i"]
                      + params["b1i"][0])
    inter = h_i @ params["w2i"] + params["b2i"][0]
    ctx = jnp.concatenate([weighted_sum, recent, inter])
    h_c = jax.nn.relu(ctx @ params["w1c"] + params["b1c"][0])
    state = h_c @ params["w2c"] + params["b2c"][0]
    h_p = jax.nn.relu(state @ params["w1p"] + params["b1p"][0])
    logits = h_p @ params["w2p"] + params["b2p"][0]
    return jax.nn.softmax(logits, axis=-1)


if __name__ == "__main__":
    E, A, H = 32, 8, 128          # embedding_dim, action_dim, hidden_dim
    N_MAX = 16                    # fixed compile-time history capacity
    B = 2                         # samples per pallas_call

    key = jax.random.PRNGKey(0)
    k_params, k_emb, k_rew = jax.random.split(key, 3)

    params = make_params(k_params, E, A, H)
    slab, rows = pack_params(params, E, H, A)

    # Two samples padded to N_MAX; pad rows hold arbitrary finite values that
    # the kernel masks out via the per-sample length scalar.
    embeddings = jax.random.normal(k_emb, (B, N_MAX, E), jnp.float32)
    reward_values = jnp.array([-1.0, 1.0, 2.0], jnp.float32)   # skip / view / read
    rewards = reward_values[jax.random.randint(k_rew, (B, N_MAX), 0, 3)]

    def run_and_check(lengths):
        out = policy_forward(embeddings, rewards, lengths, slab, rows,
                             E, H, A, N_MAX)
        out = jax.block_until_ready(out)
        assert out.shape == (B, A)
        for i in range(B):
            n = int(lengths[i])
            ref = policy_forward_ref(embeddings[i, :n], rewards[i, :n], params)
            # tolerance 2e-4: host-side weight folds + approx reciprocal in the
            # attention softmax (final action softmax stays exact).
            assert jnp.allclose(out[i], ref, atol=2e-4, rtol=2e-4), (i, out[i], ref)
            assert jnp.allclose(out[i].sum(), 1.0, atol=1e-5)

    run_and_check(jnp.array([8, 5], jnp.int32))        # variable per-sample lengths
    run_and_check(jnp.array([N_MAX, 3], jnp.int32))    # new lengths, same fixed shape

    print("KERNEL_OK")
</pallas_src>

<mosaic_0001>
module attributes {stable_mosaic.version = 11 : i64} {
  func.func @kernel(%arg0: i32, %arg1: memref<2xi32, #tpu.memory_space<smem>>, %arg2: memref<1x16x32xf32, #tpu.memory_space<vmem>>, %arg3: memref<1x16x1xf32, #tpu.memory_space<vmem>>, %arg4: memref<320x256xf32, #tpu.memory_space<vmem>>, %arg5: memref<1x1x128xf32, #tpu.memory_space<vmem>>) attributes {dimension_semantics = [#tpu.dimension_semantics<parallel>], iteration_bounds = array<i64: 2>, scalar_prefetch = 1 : i64, scratch_operands = 0 : i64, tpu.core_type = #tpu.core_type<tc>, window_params = [{transform_indices = @transform_0, window_bounds = array<i64: 1, 16, 32>}, {transform_indices = @transform_1, window_bounds = array<i64: 1, 16, 1>}, {pipeline_mode = #tpu.pipeline_mode<synchronous>, transform_indices = @transform_2, window_bounds = array<i64: 320, 256>}, {transform_indices = @transform_3, window_bounds = array<i64: 1, 1, 128>}]} {
    %0 = arith.index_cast %arg0 : i32 to index
    %1 = memref.load %arg1[%0] : memref<2xi32, #tpu.memory_space<smem>>
    %c0 = arith.constant 0 : index
    %c0_0 = arith.constant 0 : index
    %c0_1 = arith.constant 0 : index
    %2 = vector.load %arg2[%c0, %c0_0, %c0_1] : memref<1x16x32xf32, #tpu.memory_space<vmem>>, vector<1x16x32xf32>
    %3 = vector.shape_cast %2 : vector<1x16x32xf32> to vector<16x32xf32>
    %c0_2 = arith.constant 0 : index
    %c0_3 = arith.constant 0 : index
    %c0_4 = arith.constant 0 : index
    %4 = vector.load %arg3[%c0_2, %c0_3, %c0_4] : memref<1x16x1xf32, #tpu.memory_space<vmem>>, vector<1x16x1xf32>
    %5 = vector.shape_cast %4 : vector<1x16x1xf32> to vector<16x1xf32>
    %6 = tpu.iota {dimensions = array<i32: 0>} : vector<16x1xi32>
    %7 = vector.broadcast %1 : i32 to vector<16x1xi32>
    %8 = arith.cmpi slt, %6, %7 : vector<16x1xi32>
    %c1_i32 = arith.constant 1 : i32
    %9 = arith.subi %1, %c1_i32 : i32
    %10 = vector.broadcast %9 : i32 to vector<16x1xi32>
    %11 = arith.cmpi eq, %6, %10 : vector<16x1xi32>
    %12 = arith.extui %11 : vector<16x1xi1> to vector<16x1xi32>
    %13 = arith.sitofp %12 : vector<16x1xi32> to vector<16x1xf32>
    %c262 = arith.constant 262 : index
    %c128 = arith.constant 128 : index
    %14 = vector.load %arg4[%c262, %c128] : memref<320x256xf32, #tpu.memory_space<vmem>>, vector<1x32xf32>
    %c263 = arith.constant 263 : index
    %c128_5 = arith.constant 128 : index
    %15 = vector.load %arg4[%c263, %c128_5] : memref<320x256xf32, #tpu.memory_space<vmem>>, vector<1x32xf32>
    %c264 = arith.constant 264 : index
    %c128_6 = arith.constant 128 : index
    %16 = vector.load %arg4[%c264, %c128_6] : memref<320x256xf32, #tpu.memory_space<vmem>>, vector<1x32xf32>
    %cst = arith.constant 1.000000e+00 : f32
    %17 = vector.broadcast %cst : f32 to vector<16x1xf32>
    %18 = arith.cmpf oeq, %5, %17 : vector<16x1xf32>
    %cst_7 = arith.constant 2.000000e+00 : f32
    %19 = vector.broadcast %cst_7 : f32 to vector<16x1xf32>
    %20 = arith.cmpf oeq, %5, %19 : vector<16x1xf32>
    %21 = vector.shape_cast %20 : vector<16x1xi1> to vector<16x1xi1>
    %22 = vector.broadcast %21 : vector<16x1xi1> to vector<16x32xi1>
    %23 = vector.shape_cast %16 : vector<1x32xf32> to vector<1x32xf32>
    %24 = vector.broadcast %23 : vector<1x32xf32> to vector<16x32xf32>
    %25 = vector.shape_cast %14 : vector<1x32xf32> to vector<1x32xf32>
    %26 = vector.broadcast %25 : vector<1x32xf32> to vector<16x32xf32>
    %27 = arith.select %22, %24, %26 : vector<16x32xi1>, vector<16x32xf32>
    %28 = vector.shape_cast %18 : vector<16x1xi1> to vector<16x1xi1>
    %29 = vector.broadcast %28 : vector<16x1xi1> to vector<16x32xi1>
    %30 = vector.shape_cast %15 : vector<1x32xf32> to vector<1x32xf32>
    %31 = vector.broadcast %30 : vector<1x32xf32> to vector<16x32xf32>
    %32 = arith.select %29, %31, %27 : vector<16x32xi1>, vector<16x32xf32>
    %33 = tpu.concatenate %3, %32 in 1 : vector<16x32xf32>, vector<16x32xf32> -> vector<16x64xf32>
    %c0_8 = arith.constant 0 : index
    %c0_9 = arith.constant 0 : index
    %34 = vector.load %arg4[%c0_8, %c0_9] : memref<320x256xf32, #tpu.memory_space<vmem>>, vector<64x256xf32>
    %cst_10 = arith.constant dense<0.000000e+00> : vector<16x256xf32>
    %35 = tpu.matmul %33, %34, %cst_10 {dimension_numbers = #tpu.dot_dimension_numbers<[1], [0], [0], [1], [0, 0, 1, 1], [], []>} : vector<16x64xf32>, vector<64x256xf32>, vector<16x256xf32> -> vector<16x256xf32>
    %c256 = arith.constant 256 : index
    %c128_11 = arith.constant 128 : index
    %36 = vector.load %arg4[%c256, %c128_11] : memref<320x256xf32, #tpu.memory_space<vmem>>, vector<1x128xf32>
    %c257 = arith.constant 257 : index
    %c128_12 = arith.constant 128 : index
    %37 = vector.load %arg4[%c257, %c128_12] : memref<320x256xf32, #tpu.memory_space<vmem>>, vector<1x128xf32>
    %38 = vector.extract_strided_slice %35 {offsets = [0, 0], sizes = [16, 128], strides = [1, 1]} : vector<16x256xf32> to vector<16x128xf32>
    %39 = vector.broadcast %36 : vector<1x128xf32> to vector<16x128xf32>
    %40 = arith.addf %38, %39 : vector<16x128xf32>
    %41 = math.tanh %40 : vector<16x128xf32>
    %42 = vector.extract_strided_slice %35 {offsets = [0, 128], sizes = [16, 128], strides = [1, 1]} : vector<16x256xf32> to vector<16x128xf32>
    %43 = vector.broadcast %13 : vector<16x1xf32> to vector<16x128xf32>
    %44 = arith.mulf %42, %43 : vector<16x128xf32>
    %cst_13 = arith.constant dense<0.000000e+00> : vector<128xf32>
    %45 = vector.multi_reduction <add>, %44, %cst_13 [0] : vector<16x128xf32> to vector<128xf32>
    %46 = vector.shape_cast %45 : vector<128xf32> to vector<1x128xf32>
    %47 = arith.addf %46, %37 : vector<1x128xf32>
    %cst_14 = arith.constant 0.000000e+00 : f32
    %48 = vector.broadcast %cst_14 : f32 to vector<1x128xf32>
    %49 = arith.maximumf %47, %48 : vector<1x128xf32>
    %50 = vector.broadcast %13 : vector<16x1xf32> to vector<16x32xf32>
    %51 = arith.mulf %3, %50 : vector<16x32xf32>
    %cst_15 = arith.constant dense<0.000000e+00> : vector<32xf32>
    %52 = vector.multi_reduction <add>, %51, %cst_15 [0] : vector<16x32xf32> to vector<32xf32>
    %53 = vector.shape_cast %52 : vector<32xf32> to vector<1x32xf32>
    %c258 = arith.constant 258 : index
    %c128_16 = arith.constant 128 : index
    %54 = vector.load %arg4[%c258, %c128_16] : memref<320x256xf32, #tpu.memory_space<vmem>>, vector<1x128xf32>
    %55 = vector.broadcast %54 : vector<1x128xf32> to vector<16x128xf32>
    %56 = arith.mulf %41, %55 : vector<16x128xf32>
    %cst_17 = arith.constant dense<0.000000e+00> : vector<16xf32>
    %57 = vector.multi_reduction <add>, %56, %cst_17 [1] : vector<16x128xf32> to vector<16xf32>
    %58 = vector.shape_cast %57 : vector<16xf32> to vector<16x1xf32>
    %cst_18 = arith.constant -1.000000e+30 : f32
    %59 = vector.broadcast %cst_18 : f32 to vector<16x1xf32>
    %60 = arith.select %8, %58, %59 : vector<16x1xi1>, vector<16x1xf32>
    %cst_19 = arith.constant dense<0xFF800000> : vector<1xf32>
    %61 = vector.multi_reduction <maximumf>, %60, %cst_19 [0] : vector<16x1xf32> to vector<1xf32>
    %62 = vector.shape_cast %61 : vector<1xf32> to vector<1x1xf32>
    %63 = vector.broadcast %62 : vector<1x1xf32> to vector<16x1xf32>
    %64 = arith.subf %60, %63 : vector<16x1xf32>
    %65 = math.exp %64 : vector<16x1xf32>
    %cst_20 = arith.constant dense<0.000000e+00> : vector<1xf32>
    %66 = vector.multi_reduction <add>, %65, %cst_20 [0] : vector<16x1xf32> to vector<1xf32>
    %67 = vector.shape_cast %66 : vector<1xf32> to vector<1x1xf32>
    %68 = tpu.reciprocal %67 {approx = true} : vector<1x1xf32> -> vector<1x1xf32>
    %69 = vector.broadcast %68 : vector<1x1xf32> to vector<16x1xf32>
    %70 = arith.mulf %65, %69 : vector<16x1xf32>
    %71 = vector.broadcast %70 : vector<16x1xf32> to vector<16x32xf32>
    %72 = arith.mulf %3, %71 : vector<16x32xf32>
    %cst_21 = arith.constant dense<0.000000e+00> : vector<32xf32>
    %73 = vector.multi_reduction <add>, %72, %cst_21 [0] : vector<16x32xf32> to vector<32xf32>
    %74 = vector.shape_cast %73 : vector<32xf32> to vector<1x32xf32>
    %c192 = arith.constant 192 : index
    %c128_22 = arith.constant 128 : index
    %75 = vector.load %arg4[%c192, %c128_22] : memref<320x256xf32, #tpu.memory_space<vmem>>, vector<32x128xf32>
    %c224 = arith.constant 224 : index
    %c128_23 = arith.constant 128 : index
    %76 = vector.load %arg4[%c224, %c128_23] : memref<320x256xf32, #tpu.memory_space<vmem>>, vector<32x128xf32>
    %c192_24 = arith.constant 192 : index
    %c0_25 = arith.constant 0 : index
    %77 = vector.load %arg4[%c192_24, %c0_25] : memref<320x256xf32, #tpu.memory_space<vmem>>, vector<128x128xf32>
    %c259 = arith.constant 259 : index
    %c128_26 = arith.constant 128 : index
    %78 = vector.load %arg4[%c259, %c128_26] : memref<320x256xf32, #tpu.memory_space<vmem>>, vector<1x128xf32>
    %cst_27 = arith.constant dense<0.000000e+00> : vector<1x128xf32>
    %79 = tpu.matmul %74, %75, %cst_27 {dimension_numbers = #tpu.dot_dimension_numbers<[1], [0], [0], [1], [0, 0, 1, 1], [], []>} : vector<1x32xf32>, vector<32x128xf32>, vector<1x128xf32> -> vector<1x128xf32>
    %cst_28 = arith.constant dense<0.000000e+00> : vector<1x128xf32>
    %80 = tpu.matmul %53, %76, %cst_28 {dimension_numbers = #tpu.dot_dimension_numbers<[1], [0], [0], [1], [0, 0, 1, 1], [], []>} : vector<1x32xf32>, vector<32x128xf32>, vector<1x128xf32> -> vector<1x128xf32>
    %81 = arith.addf %79, %80 : vector<1x128xf32>
    %cst_29 = arith.constant dense<0.000000e+00> : vector<1x128xf32>
    %82 = tpu.matmul %49, %77, %cst_29 {dimension_numbers = #tpu.dot_dimension_numbers<[1], [0], [0], [1], [0, 0, 1, 1], [], []>} : vector<1x128xf32>, vector<128x128xf32>, vector<1x128xf32> -> vector<1x128xf32>
    %83 = arith.addf %81, %82 : vector<1x128xf32>
    %84 = arith.addf %83, %78 : vector<1x128xf32>
    %cst_30 = arith.constant 0.000000e+00 : f32
    %85 = vector.broadcast %cst_30 : f32 to vector<1x128xf32>
    %86 = arith.maximumf %84, %85 : vector<1x128xf32>
    %c64 = arith.constant 64 : index
    %c0_31 = arith.constant 0 : index
    %87 = vector.load %arg4[%c64, %c0_31] : memref<320x256xf32, #tpu.memory_space<vmem>>, vector<128x128xf32>
    %c260 = arith.constant 260 : index
    %c128_32 = arith.constant 128 : index
    %88 = vector.load %arg4[%c260, %c128_32] : memref<320x256xf32, #tpu.memory_space<vmem>>, vector<1x128xf32>
    %cst_33 = arith.constant dense<0.000000e+00> : vector<1x128xf32>
    %89 = tpu.matmul %86, %87, %cst_33 {dimension_numbers = #tpu.dot_dimension_numbers<[1], [0], [0], [1], [0, 0, 1, 1], [], []>} : vector<1x128xf32>, vector<128x128xf32>, vector<1x128xf32> -> vector<1x128xf32>
    %90 = arith.addf %89, %88 : vector<1x128xf32>
    %cst_34 = arith.constant 0.000000e+00 : f32
    %91 = vector.broadcast %cst_34 : f32 to vector<1x128xf32>
    %92 = arith.maximumf %90, %91 : vector<1x128xf32>
    %c64_35 = arith.constant 64 : index
    %c128_36 = arith.constant 128 : index
    %93 = vector.load %arg4[%c64_35, %c128_36] : memref<320x256xf32, #tpu.memory_space<vmem>>, vector<128x128xf32>
    %c261 = arith.constant 261 : index
    %c128_37 = arith.constant 128 : index
    %94 = vector.load %arg4[%c261, %c128_37] : memref<320x256xf32, #tpu.memory_space<vmem>>, vector<1x128xf32>
    %cst_38 = arith.constant dense<0.000000e+00> : vector<1x128xf32>
    %95 = tpu.matmul %92, %93, %cst_38 {dimension_numbers = #tpu.dot_dimension_numbers<[1], [0], [0], [1], [0, 0, 1, 1], [], []>} : vector<1x128xf32>, vector<128x128xf32>, vector<1x128xf32> -> vector<1x128xf32>
    %96 = arith.addf %95, %94 : vector<1x128xf32>
    %97 = tpu.iota {dimensions = array<i32: 1>} : vector<1x128xi32>
    %c8_i32 = arith.constant 8 : i32
    %98 = vector.broadcast %c8_i32 : i32 to vector<1x128xi32>
    %99 = arith.cmpi slt, %97, %98 : vector<1x128xi32>
    %cst_39 = arith.constant -1.000000e+30 : f32
    %100 = vector.broadcast %cst_39 : f32 to vector<1x128xf32>
    %101 = arith.select %99, %96, %100 : vector<1x128xi1>, vector<1x128xf32>
    %cst_40 = arith.constant dense<0xFF800000> : vector<1xf32>
    %102 = vector.multi_reduction <maximumf>, %101, %cst_40 [1] : vector<1x128xf32> to vector<1xf32>
    %103 = vector.shape_cast %102 : vector<1xf32> to vector<1x1xf32>
    %104 = vector.broadcast %103 : vector<1x1xf32> to vector<1x128xf32>
    %105 = arith.subf %101, %104 : vector<1x128xf32>
    %106 = math.exp %105 : vector<1x128xf32>
    %cst_41 = arith.constant dense<0.000000e+00> : vector<1xf32>
    %107 = vector.multi_reduction <add>, %106, %cst_41 [1] : vector<1x128xf32> to vector<1xf32>
    %108 = vector.shape_cast %107 : vector<1xf32> to vector<1x1xf32>
    %109 = vector.broadcast %108 : vector<1x1xf32> to vector<1x128xf32>
    %110 = arith.divf %106, %109 : vector<1x128xf32>
    %c0_42 = arith.constant 0 : index
    %c0_43 = arith.constant 0 : index
    %c0_44 = arith.constant 0 : index
    %111 = vector.load %arg5[%c0_42, %c0_43, %c0_44] : memref<1x1x128xf32, #tpu.memory_space<vmem>>, vector<1x1x128xf32>
    %112 = vector.shape_cast %111 : vector<1x1x128xf32> to vector<1x128xf32>
    %113 = vector.shape_cast %110 : vector<1x128xf32> to vector<1x1x128xf32>
    tpu.vector_store %arg5[%c0_42, %c0_43, %c0_44], %113 {strides = array<i32>} : memref<1x1x128xf32, #tpu.memory_space<vmem>>, vector<1x1x128xf32>,
    return
  }
  func.func @transform_0(%arg0: i32, %arg1: memref<2xi32, #tpu.memory_space<smem>>) -> (i32, i32, i32) {
    %c0_i32 = arith.constant 0 : i32
    %c0_i32_0 = arith.constant 0 : i32
    %c0_i32_1 = arith.constant 0 : i32
    return %arg0, %c0_i32, %c0_i32_0 : i32, i32, i32
  }
  func.func @transform_1(%arg0: i32, %arg1: memref<2xi32, #tpu.memory_space<smem>>) -> (i32, i32, i32) {
    %c0_i32 = arith.constant 0 : i32
    %c0_i32_0 = arith.constant 0 : i32
    %c0_i32_1 = arith.constant 0 : i32
    return %arg0, %c0_i32, %c0_i32_0 : i32, i32, i32
  }
  func.func @transform_2(%arg0: i32, %arg1: memref<2xi32, #tpu.memory_space<smem>>) -> (i32, i32) {
    %c0_i32 = arith.constant 0 : i32
    %c0_i32_0 = arith.constant 0 : i32
    %c0_i32_1 = arith.constant 0 : i32
    return %c0_i32, %c0_i32_0 : i32, i32
  }
  func.func @transform_3(%arg0: i32, %arg1: memref<2xi32, #tpu.memory_space<smem>>) -> (i32, i32, i32) {
    %c0_i32 = arith.constant 0 : i32
    %c0_i32_0 = arith.constant 0 : i32
    %c0_i32_1 = arith.constant 0 : i32
    return %arg0, %c0_i32, %c0_i32_0 : i32, i32, i32
  }
}

</mosaic_0001>

<bundles_post_ra>
// kernel: tpu_custom_call.1
= control target key start
LH: loop header
LB: loop body
LE: loop exit
PB: predicated region body
PF: predicated region fallthrough
CT: control target
= control target key end

     0   :  { %s913_s18 = smov [#allocation3]   ;;  %s1087_s0 = inlined_call_operand.vmem [shape: s32[2], index: 0, kind: input, shape index: {}]   ;;  %s1088_s1 = inlined_call_operand.vmem [shape: f32[2,16,32], index: 1, kind: input, shape index: {}]   ;;  %s1089_s2 = inlined_call_operand.vmem [shape: f32[2,16,1], index: 2, kind: input, shape index: {}]   ;;  %s1090_s3 = inlined_call_operand.hbm [shape: f32[320,256], index: 3, kind: input, shape index: {}]   ;;  %s1091_s4 = inlined_call_operand.hbm [shape: f32[2,1,128], index: 4, kind: output, shape index: {}]  }
   0x1   :  { %s10_s17 = sshll.u32 %s1087_s0, 4  ;;  %s11_s17 = int_to_ptr.vmem [resolvable:$true] %s10_s17 }
   0x2   :  { %13 = dma.vmem_to_smem %s11_s17, 16, %s913_s18, [#allocation2] }
   0x3   :  { %887 = dma.done.wait [#allocation2], 16 }
   0x4   :  { %888 = vsyncadd [#allocation2], 4294967280 }
   0x5   :  { %16 = sfence }
   0x6   :  { %17 = vsyncpa [#allocation5], 0 }
   0x7   :  { %18 = vsyncpa [#allocation6], 0 }
   0x8   :  { %20 = vsyncpa [#allocation6 + $0x1], 0  ;;  %s948_s19 = smov 0   ;;  %s950_s20 = smov 0  }
   0x9   :  { %s952_s21 = smov 0   ;;  %s954_s22 = smov 0  }
   0xa LB: > { %s969_s0 = sadd.s32 4294967295, %s911_s22   ;;  %s706_s23 = sadd.s32 4294967294, %s911_s22   ;;  %s911_s22 = sphi %s954_s22, %s1097_s22   ;;  %s907_s21 = sphi %s952_s21, %s1096_s21   ;;  %s903_s20 = sphi %s950_s20, %s1095_s20   ;;  %s899_s19 = sphi %s948_s19, %s1094_s19  }
   0xb   : > { %s973_s24 = sadd.s32 1, %s911_s22   ;;  %s106_s25 = sadd.s32 1, %s907_s21 }
   0xc   : > { %s103_s26 = ssub.s32 %s911_s22, %s973_s24  ;;  %p116_p0 = scmp.ne.s32.totalorder %s907_s21, %s903_s20 }
   0xd   : > { %p104_p1 = scmp.eq.s32.totalorder %s103_s26, 0  ;;  %p117_p2 = scmp.eq.s32.totalorder %s969_s0, 1 }
   0xe   : > { %p122_p3 = scmp.ne.s32.totalorder %s903_s20, %s899_s19  ;;  %p123_p4 = scmp.eq.s32.totalorder %s706_s23, 1 }
   0xf   : > { %s984_s27 = scalar_select %p104_p1, %s907_s21, %s106_s25  }
  0x10   : > { %p986_p5 = por %p117_p2, %p116_p0  ;;  %p990_p6 = por %p123_p4, %p122_p3 }
  0x11   : > { %p707_p7 = scmp.ge.s32.totalorder %s911_s22, 1  ;;  %p130_p8 = scmp.lt.s32.totalorder %s911_s22, 3 }
  0x12   : > { %p743_p9 = scmp.eq.s32.totalorder %s969_s0, 0  ;;  %s141_s6 = sshll.u32 %s1090_s3, 4  ;;  %s142_s6 = int_to_ptr.hbm [resolvable:$true] %s141_s6 }
  0x13   : > { %p131_p10 = pnand %p707_p7, %p130_p8  ;;  %s914_s7 = smov [#allocation4]  }
  0x14   : > { %s143_s8 = sshll.u32 %s914_s7, 4  ;;  %s915_s9 = smov 256   ;;  %s144_s8 = int_to_ptr.vmem [resolvable:$true] %s143_s8 }
  0x15   : > { %p735_p11 = pneg %p131_p10  ;;  %s916_s10 = smov 16  }
  0x16   : > { %175 = sbr.rel (%p131_p10) target bundleno = 1254 (0x4e6), region = 32 }
  0x17   : > { %p736_p12 = pnand %p743_p9, %p735_p11 }
  0x19   : > { %738 = dma.hbm_to_vmem [thread:$0]  (!%p736_p12), %s142_s6, 10240, %s144_s8, [#allocation5], %s915_s9, %s915_s9, %s916_s10  }
  0x1b   : > { %890 = dma.done.wait (%p743_p9), [#allocation5], 10240  }
  0x1c   : > { %892 = vsyncadd (%p743_p9), [#allocation5], 4294957056  ;;  %p204_p13 = scmp.lt.s32.totalorder %s969_s0, 1  ;;  %v917_v0 = vmov 0   ;;  %v289_v7 = vld [vmem:[#allocation4 + $0x70] sm:$0xff]  ;;  %v287_v8 = vld [vmem:[#allocation4 + $0x60] sm:$0xff]  ;;  %v219_v43 = vlaneseq  ;;  %s623_s7 = scalar_lea.hbm %s1091_s4, %s969_s0 }
  0x1d   : > { %786 = vset.pattern.permute.xlu1 %v917_v0  ;;  %785 = vset.pattern.permute.xlu0 %v917_v0  ;;  %v285_v9 = vld [vmem:[#allocation4 + $0x50] sm:$0xff]  ;;  %v283_v10 = vld [vmem:[#allocation4 + $0x40] sm:$0xff]  ;;  %v233_v16 = vld [vmem:[#allocation4 + $0x20e] ss:$0 sm:$0xff]  ;;  %s918_s16 = smov 32   ;;  %vm272_vm8 = vcmask 261120  }
  0x1e   : > { %s1008_s11 = scalar_select %p204_p13, %s969_s0, 1  ;;  %306 = vmatpush.msra.mxu1 %v289_v7  ;;  %v281_v11 = vld [vmem:[#allocation4 + $0x30] sm:$0xff]  ;;  %v279_v12 = vld [vmem:[#allocation4 + $0x20] sm:$0xff]  ;;  %v235_v17 = vld [vmem:[#allocation4 + $0x218] ss:$0 sm:$0xff]  ;;  %vm291_vm9 = vcmask 523264  }
  0x1f   : > { %v277_v13 = vld [vmem:[#allocation4 + $0x10] sm:$0xff]  ;;  %v234_v18 = vld [vmem:[#allocation4 + $0x20f] ss:$0 sm:$0xff]  ;;  %v275_v25 = vld [vmem:[#allocation4] sm:$0xff]  ;;  %s1030_s25 = sld [smem:[#allocation3 + %s969_s0]]  ;;  %v1034_v47 = vshrl.u32 %v219_v43, 7 }
  0x20   : > { %s727_s12 = sshll.u32 %s1008_s11, 4  ;;  %307 = vmatpush.msra.mxu1 %v287_v8  ;;  %v290_v26 = vld [vmem:[#allocation4 + $0x78] sm:$0xff]  ;;  %v288_v27 = vld [vmem:[#allocation4 + $0x68] sm:$0xff]  ;;  %v438_v45 = vld [vmem:[#allocation4 + $0x270] sm:$0xff]  ;;  %v919_v49 = vmov 0.0   ;;  %vm588_vm15 = vcmask 1040384  }
  0x21   : > { %s213_s15 = scalar_lea.vmem %s1089_s2, %s727_s12  ;;  %v286_v28 = vld [vmem:[#allocation4 + $0x58] sm:$0xff]  ;;  %v284_v29 = vld [vmem:[#allocation4 + $0x48] sm:$0xff]  ;;  %s208_s23 = scalar_lea.vmem %s1088_s1, %s727_s12  ;;  %v437_v48 = vld [vmem:[#allocation4 + $0x260] sm:$0xff]  ;;  %v1038_v51 = vadd.s32 8, %v1034_v47 }
  0x22   : > { %v218_v1 = vld [vmem:[%s213_s15 + $0x8] sm:$0xff]  ;;  %v217_v2 = vld [vmem:[%s213_s15] sm:$0xff]  ;;  %308 = vmatpush.msra.mxu1 %v285_v9  ;;  %v282_v30 = vld [vmem:[#allocation4 + $0x38] sm:$0xff]  ;;  %s202_s30 = sand.u32 1, %s903_s20   ;;  %s627_s10 = sshll.u32 %s623_s7, 4  ;;  %s628_s10 = int_to_ptr.hbm [resolvable:$true] %s627_s10 }
  0x23   : > { %vm239_vm0 = vcmp.eq.f32.partialorder %v218_v1, 2.0  ;;  %vm238_vm1 = vcmp.eq.f32.partialorder %v217_v2, 2.0  ;;  %vm237_vm2 = vcmp.eq.f32.partialorder %v218_v1, 1.0  ;;  %vm236_vm3 = vcmp.eq.f32.partialorder %v217_v2, 1.0  ;;  %v280_v31 = vld [vmem:[#allocation4 + $0x28] sm:$0xff]  ;;  %v278_v32 = vld [vmem:[#allocation4 + $0x18] sm:$0xff] }
  0x24   : > { %v241_v3 = vsel %vm239_vm0, 1, %v917_v0  ;;  %v240_v4 = vsel %vm238_vm1, 1, %v917_v0  ;;  %v253_v5 = vsel %vm237_vm2, 1, %v917_v0  ;;  %v252_v6 = vsel %vm236_vm3, 1, %v917_v0  ;;  %309 = vmatpush.msra.mxu1 %v283_v10  ;;  %v276_v33 = vld [vmem:[#allocation4 + $0x8] sm:$0xff]  ;;  %v1021_v34 = vld [vmem:[%s208_s23] sm:$0xff] }
  0x25   : > { %246 = vperm.xlu1 %786, %v241_v3   ;;  %243 = vperm.xlu0 %785, %v240_v4   ;;  %v1025_v37 = vld [vmem:[%s208_s23 + $0x8] sm:$0xff]  ;;  %v422_v40 = vld [vmem:[#allocation4 + $0x1f8] sm:$0xff]  ;;  %s716_s26 = sadd.s32 4294967295, %s1030_s25  ;;  %v436_v53 = vld [vmem:[#allocation4 + $0x250] sm:$0xff]  ;;  %s203_s8 = scalar_lea.vmem [#allocation7], %s202_s30 }
  0x26   : > { %310 = vmatpush.msra.mxu1 %v281_v11  ;;  %455 = vmatpush.msra.mxu2 %v422_v40  ;;  %v421_v41 = vld [vmem:[#allocation4 + $0x1e8] sm:$0xff]  ;;  %v420_v42 = vld [vmem:[#allocation4 + $0x1d8] sm:$0xff]  ;;  %v226_v46 = vstv %s716_s26  ;;  %v435_v54 = vld [vmem:[#allocation4 + $0x240] sm:$0xff]  ;;  %v222_v40 = vstv %s1030_s25  ;;  %s625_s9 = sshll.u32 %s203_s8, 4  ;;  %s615_s11 = scalar_lea.sflag [#allocation6], %s202_s30  ;;  %s626_s9 = int_to_ptr.vmem [resolvable:$true] %s625_s9 }
  0x27   : > { %v419_v44 = vld [vmem:[#allocation4 + $0x1c8] sm:$0xff]  ;;  %vm227_vm10 = vcmp.eq.s32.totalorder %v1034_v47, %v226_v46  ;;  %vm228_vm11 = vcmp.eq.s32.totalorder %v1038_v51, %v226_v46  ;;  %v434_v57 = vld [vmem:[#allocation4 + $0x230] sm:$0xff]  ;;  %v433_v61 = vld [vmem:[#allocation4 + $0x220] sm:$0xff]  ;;  %vm223_vm12 = vcmp.lt.s32.totalorder %v1034_v47, %v222_v40  ;;  %vm224_vm13 = vcmp.lt.s32.totalorder %v1038_v51, %v222_v40  ;;  %s857_s12 = sshra.s32 %s628_s10, 4  ;;  %s863_s15 = scalar_lea.hbm %s1091_s4, 2  ;;  %s858_s12 = int_to_ptr.hbm [resolvable:$true] %s857_s12 }
  0x28   : > { %311 = vmatpush.msra.mxu1 %v279_v12  ;;  %456 = vmatpush.msra.mxu2 %v421_v41  ;;  %v717_v50 = vsel %vm227_vm10, 1.0, %v919_v49  ;;  %v718_v55 = vsel %vm228_vm11, 1.0, %v919_v49  ;;  %v432_v63 = vld [vmem:[#allocation4 + $0x210] sm:$0xff]  ;;  %v431_v1 = vld [vmem:[#allocation4 + $0x200] sm:$0xff]  ;;  %v344_v4 = vld [vmem:[#allocation4 + $0x208] ss:$0 sm:$0xff]  ;;  %p864_p3 = scmp.lt.s32.totalorder %s858_s12, %s1091_s4 }
  0x29   : > { %v361_v52 = vmul.f32 %v717_v50, %v1021_v34  ;;  %v362_v58 = vmul.f32 %v718_v55, %v1025_v37  ;;  %v430_v2 = vld [vmem:[#allocation4 + $0x1f0] sm:$0xff]  ;;  %v427_v11 = vld [vmem:[#allocation4 + $0x1c0] sm:$0xff]  ;;  %v416_v47 = vld [vmem:[#allocation4 + $0x198] sm:$0xff]  ;;  %s859_s13 = scalar_lea.hbm %s858_s12, 1 }
  0x2a   : > { %312 = vmatpush.msra.mxu1 %v277_v13  ;;  %457 = vmatpush.msra.mxu2 %v420_v42  ;;  %v428_v9 = vld [vmem:[#allocation4 + $0x1d0] sm:$0xff]  ;;  %v415_v51 = vld [vmem:[#allocation4 + $0x188] sm:$0xff]  ;;  %v558_v40 = vld [vmem:[#allocation4 + $0x138] sm:$0xff]  ;;  %p860_p0 = scmp.ne.s32.totalorder %s858_s12, %s859_s13  ;;  %p865_p4 = scmp.lt.s32.totalorder %s863_s15, %s859_s13 }
  0x2b   : > { %v363_v56 = vsel %vm272_vm8, %v361_v52, 0.0  ;;  %v364_v59 = vsel %vm272_vm8, %v362_v58, 0.0  ;;  %v426_v13 = vld [vmem:[#allocation4 + $0x1b0] sm:$0xff] }
  0x2c   : > { %313 = vmatpush.msra.mxu1 %v275_v25  ;;  %458 = vmatpush.msra.mxu2 %v419_v44  ;;  %v365_v60 = vadd.f32 %v364_v59, %v363_v56  ;;  %v418_v59 = vld [vmem:[#allocation4 + $0x1b8] sm:$0xff]  ;;  %p861_p1 = pnand %p860_p0, %p986_p5  ;;  %p866_p7 = por %p865_p4, %p864_p3 }
  0x2d   : > { %258 = vperm.xlu1 %786, %v253_v5   ;;  %255 = vperm.xlu0 %785, %v252_v6   ;;  %v429_v5 = vld [vmem:[#allocation4 + $0x1e0] sm:$0xff] }
  0x2e   : > { %329 = vmatpush.msrb.mxu1 %v290_v26  ;;  %486 = vmatpush.msrb.mxu2 %v438_v45  ;;  %v366_v62 = vrot.slane %v365_v60, 4  ;;  %p862_p2 = pneg %p861_p1 }
  0x2f   : > { %478 = vmatpush.msra.mxu3 %v418_v59 }
  0x30   : > { %330 = vmatpush.msrb.mxu1 %v288_v27  ;;  %487 = vmatpush.msrb.mxu2 %v437_v48  ;;  %v367_v0 = vadd.f32 %v366_v62, %v365_v60  ;;  %v417_v60 = vld [vmem:[#allocation4 + $0x1a8] sm:$0xff]  ;;  %p867_p8 = pnand %p866_p7, %p862_p2 }
  0x31   : > { %479 = vmatpush.msra.mxu3 %v417_v60  ;;  %v549_v60 = vld [vmem:[#allocation4 + $0xa8] sm:$0xff] }
  0x32   : > { %331 = vmatpush.msrb.mxu1 %v286_v28  ;;  %488 = vmatpush.msrb.mxu2 %v436_v53  ;;  %v368_v3 = vrot.slane %v367_v0, 2 }
  0x33   : > { %480 = vmatpush.msra.mxu3 %v416_v47  ;;  %v548_v47 = vld [vmem:[#allocation4 + $0x98] sm:$0xff] }
  0x34   : > { %332 = vmatpush.msrb.mxu1 %v284_v29  ;;  %489 = vmatpush.msrb.mxu2 %v435_v54  ;;  %v369_v6 = vadd.f32 %v368_v3, %v367_v0 }
  0x35   : > { %481 = vmatpush.msra.mxu3 %v415_v51  ;;  %v547_v51 = vld [vmem:[#allocation4 + $0x88] sm:$0xff] }
  0x36   : > { %333 = vmatpush.msrb.mxu1 %v282_v30  ;;  %490 = vmatpush.msrb.mxu2 %v434_v57  ;;  %v370_v10 = vrot.slane %v369_v6, 1 }
  0x38   : > { %334 = vmatpush.msrb.mxu1 %v280_v31  ;;  %491 = vmatpush.msrb.mxu2 %v433_v61  ;;  %v371_v12 = vadd.f32 %v370_v10, %v369_v6  ;;  %v520_v10 = vld [vmem:[#allocation4 + $0x130] sm:$0xff] }
  0x3a   : > { %335 = vmatpush.msrb.mxu1 %v278_v32  ;;  %492 = vmatpush.msrb.mxu2 %v432_v63 }
  0x3b   : > { %723 = vmatmul.msk.f32.vlgmr.msra.gmra.mxu2 %vm272_vm8, %v371_v12  ;;  %v518_v12 = vld [vmem:[#allocation4 + $0x110] sm:$0xff] }
  0x3c   : > { %336 = vmatpush.msrb.mxu1 %v276_v33  ;;  %493 = vmatpush.msrb.mxu2 %v431_v1 }
  0x3e   : > { %494 = vmatpush.msrb.mxu2 %v430_v2 }
  0x40   : > { %495 = vmatpush.msrb.mxu2 %v429_v5  ;;  %v523_v5 = vld [vmem:[#allocation4 + $0x160] sm:$0xff] }
  0x42   : > { %496 = vmatpush.msrb.mxu2 %v428_v9  ;;  %v521_v9 = vld [vmem:[#allocation4 + $0x140] sm:$0xff] }
  0x44   : > { %497 = vmatpush.msrb.mxu2 %v427_v11  ;;  %v519_v11 = vld [vmem:[#allocation4 + $0x120] sm:$0xff] }
  0x46   : > { %498 = vmatpush.msrb.mxu2 %v426_v13 }
  0x97   : > { %v244_v14 = vpop.permute.xlu0 %243  ;;  %v247_v15 = vpop.permute.xlu1 %246 }
  0x98   : > { %vm248_vm4 = vcmp.eq.s32.totalorder %v244_v14, 1  ;;  %vm249_vm6 = vcmp.eq.s32.totalorder %v247_v15, 1  ;;  %v425_v14 = vld [vmem:[#allocation4 + $0x1a0] sm:$0xff]  ;;  %v372_v15 = vld [vmem:[#allocation4 + $0x20a] ss:$0 sm:$0xff] }
  0x99   : > { %v250_v20 = vsel %vm248_vm4, %v235_v17, %v233_v16  ;;  %v251_v23 = vsel %vm249_vm6, %v235_v17, %v233_v16  ;;  %v424_v16 = vld [vmem:[#allocation4 + $0x190] sm:$0xff]  ;;  %499 = vmatpush.msrb.mxu2 %v425_v14  ;;  %v517_v14 = vld [vmem:[#allocation4 + $0x100] sm:$0xff] }
  0x9b   : > { %500 = vmatpush.msrb.mxu2 %v424_v16 }
  0x9f   : > { %v256_v19 = vpop.permute.xlu0 %255  ;;  %v259_v22 = vpop.permute.xlu1 %258 }
  0xa0   : > { %vm260_vm5 = vcmp.eq.s32.totalorder %v256_v19, 1  ;;  %vm261_vm7 = vcmp.eq.s32.totalorder %v259_v22, 1 }
  0xa1   : > { %v262_v21 = vsel %vm260_vm5, %v234_v18, %v250_v20  ;;  %v263_v24 = vsel %vm261_vm7, %v234_v18, %v251_v23  ;;  %v423_v20 = vld [vmem:[#allocation4 + $0x180] sm:$0xff] }
  0xa2   : > { %266 = vrot.lane.b32.xlu2 %v262_v21, %s918_s16  ;;  %501 = vmatpush.msrb.mxu2 %v423_v20  ;;  %v515_v20 = vld [vmem:[#allocation4 + $0xe0] sm:$0xff] }
  0xaa   : > { %268 = vrot.lane.b32.xlu2 %v263_v24, %s918_s16 }
  0xfc   : > { %v267_v35 = vpop.permute.xlu2 %266 }
  0xfd   : > { %v273_v36 = vsel %vm272_vm8, %v1021_v34, %v267_v35  ;;  %v345_v35 = vld [vmem:[#allocation4 + $0x209] ss:$0 sm:$0xff] }
  0xfe   : > { %719 = vmatmul.msk.f32.vlgmr.msra.gmra.mxu1 %vm291_vm9, %v273_v36 }
 0x104   : > { %v269_v38 = vpop.permute.xlu2 %268 }
 0x105   : > { %v274_v39 = vsel %vm272_vm8, %v1025_v37, %v269_v38 }
 0x106   : > { %720 = vmatmul.msk.f32.gmra.mxu1 %vm291_vm9, %v274_v39 }
 0x10e   : > { %721 = vmatmul.msk.f32.vlgmr.msrb.gmra.mxu1 %vm291_vm9, %v273_v36 }
 0x116   : > { %722 = vmatmul.msk.f32.gmra.mxu1 %vm291_vm9, %v274_v39 }
 0x17b   : > { %v315_v7 = vpop.f32.mrf.mxu1 }
 0x17c   : > { %v346_v8 = vadd.f32 %v344_v4, %v315_v7  ;;  %v522_v7 = vld [vmem:[#allocation4 + $0x150] sm:$0xff] }
 0x17e   : > { %787 = vtanh.f32 %v346_v8 }
 0x183   : > { %v318_v17 = vpop.f32.mrf.mxu1 }
 0x184   : > { %v788_v18 = vpop.eup %787  ;;  %v347_v19 = vadd.f32 %v344_v4, %v318_v17  ;;  %v524_v4 = vld [vmem:[#allocation4 + $0x170] sm:$0xff] }
 0x185   : > { %v373_v21 = vmul.f32 %v788_v18, %v372_v15  ;;  %526 = vmatpush.msrb.mxu3 %v524_v4  ;;  %v516_v17 = vld [vmem:[#allocation4 + $0xf0] sm:$0xff] }
 0x186   : > { %789 = vtanh.f32 %v347_v19 }
 0x187   : > { %375 = vadd.xlane.f32.xlu0 %v373_v21  ;;  %527 = vmatpush.msrb.mxu3 %v523_v5 }
 0x189   : > { %528 = vmatpush.msrb.mxu3 %v522_v7 }
 0x18b   : > { %v338_v22 = vpop.f32.mrf.mxu1  ;;  %529 = vmatpush.msrb.mxu3 %v521_v9 }
 0x18c   : > { %v790_v23 = vpop.eup %789  ;;  %v350_v26 = vmul.f32 %v717_v50, %v338_v22 }
 0x18d   : > { %v374_v24 = vmul.f32 %v790_v23, %v372_v15  ;;  %530 = vmatpush.msrb.mxu3 %v520_v10 }
 0x18f   : > { %377 = vadd.xlane.f32.xlu1 %v374_v24  ;;  %531 = vmatpush.msrb.mxu3 %v519_v11  ;;  %v514_v24 = vld [vmem:[#allocation4 + $0xd0] sm:$0xff] }
 0x191   : > { %532 = vmatpush.msrb.mxu3 %v518_v12 }
 0x193   : > { %v341_v25 = vpop.f32.mrf.mxu1  ;;  %533 = vmatpush.msrb.mxu3 %v517_v14 }
 0x194   : > { %v351_v27 = vmul.f32 %v718_v55, %v341_v25 }
 0x195   : > { %534 = vmatpush.msrb.mxu3 %v516_v17 }
 0x196   : > { %v352_v28 = vadd.f32 %v351_v27, %v350_v26 }
 0x197   : > { %535 = vmatpush.msrb.mxu3 %v515_v20 }
 0x198   : > { %v353_v29 = vrot.slane %v352_v28, 4 }
 0x199   : > { %536 = vmatpush.msrb.mxu3 %v514_v24 }
 0x19a   : > { %v354_v30 = vadd.f32 %v353_v29, %v352_v28 }
 0x19c   : > { %v355_v31 = vrot.slane %v354_v30, 2 }
 0x19e   : > { %v356_v32 = vadd.f32 %v355_v31, %v354_v30  ;;  %v511_v31 = vld [vmem:[#allocation4 + $0xa0] sm:$0xff] }
 0x1a0   : > { %v357_v33 = vrot.slane %v356_v32, 1 }
 0x1a2   : > { %v358_v36 = vadd.f32 %v357_v33, %v356_v32  ;;  %v510_v32 = vld [vmem:[#allocation4 + $0x90] sm:$0xff]  ;;  %v509_v33 = vld [vmem:[#allocation4 + $0x80] sm:$0xff] }
 0x1a4   : > { %v359_v38 = vadd.f32 %v358_v36, %v345_v35  ;;  %v562_v35 = vld [vmem:[#allocation4 + $0x178] sm:$0xff]  ;;  %v561_v36 = vld [vmem:[#allocation4 + $0x168] sm:$0xff] }
 0x1a5   : > { %564 = vmatpush.msra.mxu0 %v562_v35 }
 0x1a6   : > { %v360_v39 = vmax.f32 %v359_v38, 0.0  ;;  %v560_v38 = vld [vmem:[#allocation4 + $0x158] sm:$0xff] }
 0x1a7   : > { %565 = vmatpush.msra.mxu0 %v561_v36 }
 0x1a8   : > { %502 = vmatmul.f32.vlgmr.msrb.gmra.mxu2 %v360_v39  ;;  %v559_v39 = vld [vmem:[#allocation4 + $0x148] sm:$0xff] }
 0x1a9   : > { %566 = vmatpush.msra.mxu0 %v560_v38 }
 0x1ab   : > { %567 = vmatpush.msra.mxu0 %v559_v39 }
 0x1ad   : > { %568 = vmatpush.msra.mxu0 %v558_v40 }
 0x1fa   : > { %v376_v41 = vpop.xlane.xlu0 %375 }
 0x1fb   : > { %v379_v44 = vsel %vm223_vm12, %v376_v41, -1e+30  ;;  %v557_v41 = vld [vmem:[#allocation4 + $0x128] sm:$0xff] }
 0x1fc   : > { %569 = vmatpush.msra.mxu0 %v557_v41 }
 0x202   : > { %v378_v42 = vpop.xlane.xlu1 %377 }
 0x203   : > { %v380_v45 = vsel %vm224_vm13, %v378_v42, -1e+30  ;;  %v556_v42 = vld [vmem:[#allocation4 + $0x118] sm:$0xff] }
 0x204   : > { %v381_v46 = vmax.f32 %v379_v44, %v380_v45  ;;  %570 = vmatpush.msra.mxu0 %v556_v42 }
 0x206   : > { %v382_v48 = vrot.slane %v381_v46, 4 }
 0x208   : > { %v383_v49 = vmax.f32 %v381_v46, %v382_v48  ;;  %v460_v46 = vpop.f32.mrf.mxu2  ;;  %v553_v48 = vld [vmem:[#allocation4 + $0xe8] sm:$0xff] }
 0x20a   : > { %v384_v50 = vrot.slane %v383_v49, 2 }
 0x20c   : > { %v385_v52 = vmax.f32 %v383_v49, %v384_v50  ;;  %v552_v49 = vld [vmem:[#allocation4 + $0xd8] sm:$0xff]  ;;  %v551_v50 = vld [vmem:[#allocation4 + $0xc8] sm:$0xff] }
 0x20e   : > { %v386_v53 = vrot.slane %v385_v52, 1 }
 0x210   : > { %v387_v54 = vmax.f32 %v385_v52, %v386_v53  ;;  %v550_v52 = vld [vmem:[#allocation4 + $0xb8] sm:$0xff] }
 0x212   : > { %v388_v55 = vsub.f32 %v379_v44, %v387_v54  ;;  %v389_v56 = vsub.f32 %v380_v45, %v387_v54  ;;  %v555_v44 = vld [vmem:[#allocation4 + $0x108] sm:$0xff]  ;;  %v554_v45 = vld [vmem:[#allocation4 + $0xf8] sm:$0xff] }
 0x213   : > { %571 = vmatpush.msra.mxu0 %v555_v44 }
 0x214   : > { %v390_v57 = vmul.f32 1.442695, %v388_v55  ;;  %v392_v58 = vmul.f32 1.442695, %v389_v56  ;;  %v439_v56 = vld [vmem:[#allocation4 + $0x20b] ss:$0 sm:$0xff] }
 0x215   : > { %572 = vmatpush.msra.mxu0 %v554_v45 }
 0x216   : > { %791 = vpow2.f32 %v390_v57 }
 0x217   : > { %793 = vpow2.f32 %v392_v58  ;;  %573 = vmatpush.msra.mxu0 %v553_v48 }
 0x219   : > { %574 = vmatpush.msra.mxu0 %v552_v49 }
 0x21b   : > { %575 = vmatpush.msra.mxu0 %v551_v50 }
 0x21c   : > { %v792_v61 = vpop.eup %791 }
 0x21d   : > { %v794_v62 = vpop.eup %793  ;;  %576 = vmatpush.msra.mxu0 %v550_v52 }
 0x21e   : > { %v394_v63 = vadd.f32 %v794_v62, %v792_v61 }
 0x21f   : > { %577 = vmatpush.msra.mxu0 %v549_v60 }
 0x220   : > { %v395_v0 = vrot.slane %v394_v63, 4 }
 0x221   : > { %578 = vmatpush.msra.mxu0 %v548_v47 }
 0x222   : > { %v396_v1 = vadd.f32 %v395_v0, %v394_v63 }
 0x223   : > { %579 = vmatpush.msra.mxu0 %v547_v51 }
 0x224   : > { %v397_v2 = vrot.slane %v396_v1, 2 }
 0x226   : > { %v398_v3 = vadd.f32 %v397_v2, %v396_v1  ;;  %v585_v1 = vand.u32 127, %v219_v43  ;;  %v563_v2 = vld [vmem:[#allocation4 + $0x20d] ss:$0 sm:$0xff] }
 0x228   : > { %v399_v6 = vrot.slane %v398_v3, 1  ;;  %vm586_vm14 = vcmp.lt.s32.totalorder %v585_v1, 8 }
 0x22a   : > { %v400_v8 = vadd.f32 %v399_v6, %v398_v3 }
 0x22b   : > { %v503_v55 = vpop.f32.mrf.mxu2 }
 0x22c   : > { %795 = vrcp.f32 %v400_v8 }
 0x232   : > { %v796_v13 = vpop.eup %795 }
 0x233   : > { %v402_v15 = vmul.f32 %v796_v13, %v792_v61  ;;  %v403_v16 = vmul.f32 %v796_v13, %v794_v62  ;;  %v525_v61 = vld [vmem:[#allocation4 + $0x20c] ss:$0 sm:$0xff] }
 0x235   : > { %v405_v18 = vmul.f32 %v403_v16, %v1025_v37  ;;  %v404_v19 = vmul.f32 %v402_v15, %v1021_v34  ;;  %v513_v34 = vld [vmem:[#allocation4 + $0xc0] sm:$0xff]  ;;  %v512_v37 = vld [vmem:[#allocation4 + $0xb0] sm:$0xff] }
 0x236   : > { %537 = vmatpush.msrb.mxu3 %v513_v34 }
 0x237   : > { %v406_v21 = vsel %vm272_vm8, %v404_v19, 0.0  ;;  %v407_v22 = vsel %vm272_vm8, %v405_v18, 0.0 }
 0x238   : > { %v408_v23 = vadd.f32 %v407_v22, %v406_v21  ;;  %538 = vmatpush.msrb.mxu3 %v512_v37 }
 0x23a   : > { %v409_v25 = vrot.slane %v408_v23, 4  ;;  %539 = vmatpush.msrb.mxu3 %v511_v31 }
 0x23c   : > { %v410_v26 = vadd.f32 %v409_v25, %v408_v23  ;;  %540 = vmatpush.msrb.mxu3 %v510_v32 }
 0x23e   : > { %v411_v27 = vrot.slane %v410_v26, 2  ;;  %541 = vmatpush.msrb.mxu3 %v509_v33 }
 0x240   : > { %v412_v28 = vadd.f32 %v411_v27, %v410_v26 }
 0x242   : > { %v413_v29 = vrot.slane %v412_v28, 1 }
 0x244   : > { %v414_v30 = vadd.f32 %v413_v29, %v412_v28 }
 0x246   : > { %724 = vmatmul.msk.f32.vlgmr.msra.gmra.mxu3 %vm272_vm8, %v414_v30 }
 0x2c9   : > { %v483_v53 = vpop.f32.mrf.mxu3 }
 0x2ca   : > { %v484_v54 = vadd.f32 %v483_v53, %v460_v46 }
 0x2cc   : > { %v506_v57 = vadd.f32 %v503_v55, %v484_v54 }
 0x2ce   : > { %v507_v58 = vadd.f32 %v506_v57, %v439_v56 }
 0x2d0   : > { %v508_v59 = vmax.f32 %v507_v58, 0.0 }
 0x2d2   : > { %542 = vmatmul.f32.vlgmr.msrb.gmra.mxu3 %v508_v59 }
 0x355   : > { %v543_v62 = vpop.f32.mrf.mxu3 }
 0x356   : > { %v544_v63 = vadd.f32 %v543_v62, %v525_v61 }
 0x358   : > { %v546_v0 = vmax.f32 %v544_v63, 0.0 }
 0x35a   : > { %580 = vmatmul.f32.vlgmr.msra.gmra.mxu0 %v546_v0 }
 0x3d7   : > { %v581_v3 = vpop.f32.mrf.mxu0 }
 0x3d8   : > { %v582_v4 = vadd.f32 %v581_v3, %v563_v2 }
 0x3da   : > { %v587_v5 = vsel %vm586_vm14, %v582_v4, -1e+30 }
 0x3db   : > { %v589_v6 = vsel %vm588_vm15, %v587_v5, -inf }
 0x3dc   : > { %590 = vmax.xlane.f32.xlu2 %v589_v6 }
 0x44f   : > { %v591_v7 = vpop.xlane.xlu2 %590 }
 0x450   : > { %v592_v8 = vsub.f32 %v587_v5, %v591_v7 }
 0x452   : > { %v593_v9 = vmul.f32 1.442695, %v592_v8 }
 0x454   : > { %797 = vpow2.f32 %v593_v9 }
 0x45a   : > { %v798_v10 = vpop.eup %797 }
 0x45b   : > { %v595_v11 = vsel %vm588_vm15, %v798_v10, 0.0 }
 0x45c   : > { %596 = vadd.xlane.f32.xlu2 %v595_v11 }
 0x4cf   : > { %v597_v12 = vpop.xlane.xlu2 %596 }
 0x4d0   : > { %799 = vrcp.f32 %v597_v12  ;;  %v609_v15 = vand.u32 2147483648, %v597_v12  ;;  %v607_v17 = vand.u32 2147483647, %v597_v12  ;;  %vm603_vm1 = vweird.f32 %v597_v12 }
 0x4d2   : > { %v610_v19 = vor.u32 1.1754944e-38, %v609_v15  ;;  %vm608_vm3 = vcmp.eq.f32.partialorder %v607_v17, 8.507059e+37 }
 0x4d6   : > { %v800_v43 = vpop.eup %799 }
 0x4d7   : > { %v599_v13 = vmul.f32 %v800_v43, %v597_v12  ;;  %vm604_vm0 = vweird.f32 %v800_v43 }
 0x4d8   : > { %vm605_vm2 = vmor %vm603_vm1, %vm604_vm0 }
 0x4d9   : > { %v600_v14 = vsub.f32 1.0, %v599_v13 }
 0x4db   : > { %v601_v16 = vmul.f32 %v800_v43, %v600_v14 }
 0x4dd   : > { %v602_v18 = vadd.f32 %v800_v43, %v601_v16 }
 0x4df   : > { %v606_v20 = vsel %vm605_vm2, %v800_v43, %v602_v18 }
 0x4e0   : > { %v611_v21 = vsel %vm608_vm3, %v610_v19, %v606_v20 }
 0x4e1   : > { %v612_v22 = vmul.f32 %v798_v10, %v611_v21 }
 0x4e3   : > { %613 = vst [vmem:[%s203_s8] sm:$0x1] %v612_v22 }
 0x4e4   : > { %870 = shalt.err (!%p867_p8)
}
 0x4e5   : > { %733 = dma.vmem_to_hbm [thread:$0]  (%p986_p5), %s626_s9, 16, %s628_s10, %s615_s11  }
 0x4e6 PF: > { %p745_p9 = scmp.ge.s32.totalorder %s911_s22, 2  ;;  %s639_s18 = sand.u32 1, %s899_s19  }
 0x4e7   : > { %s640_s23 = scalar_lea.sflag [#allocation6], %s639_s18 }
 0x4e8   : > { %p740_p10 = pnand %p745_p9, %p990_p6 }
 0x4ea   : > { %p741_p11 = pneg %p740_p10 }
 0x4ec   : > { %894 = dma.done.wait (%p741_p11), %s640_s23, 16  }
 0x4ed   : > { %896 = vsyncadd (%p741_p11), %s640_s23, 4294967280  ;;  %p23_p12 = scmp.ge.s32.totalorder %s973_s24, 4   ;;  %s1094_s19 = smov %s903_s20 }
 0x4ee   : > { %s1095_s20 = smov %s907_s21  ;;  %s1096_s21 = smov %s984_s27 }
 0x4ef   : > { %s1097_s22 = smov %s973_s24  ;;  %25 = sbr.rel (!%p23_p12) target bundleno = 10 (0xa), region = 75 }
 0x4f4   :  { %645 = vsyncpa [#allocation5], 1 }
 0x4f5   :  { %647 = vsyncpa [#allocation5 + $0x1], 1 }
 0x4f6   :  { %648 = vsyncpa [#allocation6], 1 }
 0x4f7   :  { %650 = vsyncpa [#allocation6 + $0x1], 1 }

</bundles_post_ra>
